<compile_context>
chip_gen: v6e
topology: v6e:2x2x1
jax: 0.10.0
libtpu: 0.0.40
codegen_flags: <defaults>
</compile_context>

<pallas_src>
import functools
import math

import jax
import jax.numpy as jnp
import numpy as np
from jax.experimental import pallas as pl
from jax.experimental.pallas import tpu as pltpu


def _conv_band_kernel(x_ref, w_ref, b_ref, o_ref, *, k, band_h, W):
    """One image row-band:
       out[co, h*W + w] = b[co] + sum_{c,i,j} x[h+i, w+j, c] * w[i*k+j, co, c]."""
    # x_ref: (1, band_h + 2p, W + 2p, Cin)   NHWC band with halo, zero-padded
    # w_ref: (k*k, Cout, Cin)                scaled by weight_gain * act_gain
    # b_ref: (Cout, 1)   f32                 scaled by act_gain
    # o_ref: (1, Cout, band_h * W)
    cin = x_ref.shape[-1]
    cout = w_ref.shape[1]
    m = band_h * W
    # Start the accumulator from the (already gain-scaled) bias -> no extra pass.
    acc = jnp.broadcast_to(b_ref[...], (cout, m)).astype(jnp.float32)
    for i in range(k):
        for j in range(k):
            xs = x_ref[0, i:i + band_h, j:j + W, :]          # (band_h, W, Cin)
            xs = xs.reshape(m, cin)                          # pixels x channels
            # (Cout, Cin) x (M, Cin)^T -> (Cout, M): result is lane-dense in M.
            acc = acc + jax.lax.dot_general(
                w_ref[i * k + j], xs,
                dimension_numbers=(((1,), (1,)), ((), ())),
                preferred_element_type=jnp.float32)
    # TODO(synk): conv_clamp (None by default) would be a jnp.clip here.
    o_ref[0] = acc.astype(o_ref.dtype)


def _choose_band_height(H, W, target_m):
    """Rows per band so band_h*W ~= target_m and band_h*W % 128 == 0 (or full image)."""
    if H * W <= 2 * target_m:
        return H, 1                                   # whole image per grid step
    g = 128 // math.gcd(W, 128)                       # smallest band_h with band_h*W % 128 == 0
    band_h = max(g, (min(H, max(1, target_m // W)) // g) * g)
    nb = -(-H // band_h)
    return band_h, nb


def conv2d_layer_forward(x, weight, bias, *, gain=1.0, activation="linear",
                         up=1, down=1, conv_clamp=None, compute_dtype=None,
                         target_m=1024):
    """Conv2dLayer.forward for up=down=1, activation='linear', conv_clamp=None."""
    # TODO(synk): up/down resampling (upfirdn2d resample_filter) not implemented.
    assert up == 1 and down == 1, "only up=down=1 supported"
    assert activation == "linear" and conv_clamp is None
    N, C_in, H, W = x.shape
    C_out, C_in_w, kh, kw = weight.shape
    assert C_in_w == C_in and kh == kw and kh % 2 == 1
    k = kh
    p = k // 2
    out_dtype = x.dtype
    compute_dtype = out_dtype if compute_dtype is None else compute_dtype

    weight_gain = 1.0 / np.sqrt(C_in * k * k)
    act_gain = 1.0 * gain                             # def_gain('linear') == 1
    # Fold weight_gain*act_gain into the weights, act_gain into the bias.
    # Scale in f32 first, cast to compute dtype once (avoids early bf16 rounding).
    w_f32 = weight.astype(jnp.float32) * np.float32(weight_gain * act_gain)
    w_taps = jnp.transpose(w_f32, (2, 3, 0, 1)).reshape(k * k, C_out, C_in)
    w_taps = w_taps.astype(compute_dtype)             # (k*k, Cout, Cin)
    b_eff = (bias.astype(jnp.float32) * np.float32(act_gain)).reshape(C_out, 1)

    # ---- layout glue (single cheap pass, no im2col): NCHW -> padded NHWC bands
    band_h, nb = _choose_band_height(H, W, target_m)
    Hp = band_h * nb
    W_pad = W + 2 * p
    x_nhwc = jnp.transpose(x, (0, 2, 3, 1)).astype(compute_dtype)
    x_padded = jnp.pad(x_nhwc, ((0, 0), (p, p + (Hp - H)), (p, p), (0, 0)))
    if nb == 1:
        x_bands = x_padded                            # (N, band_h+2p, W+2p, Cin)
    else:
        # Only the 2p halo rows are duplicated (<< 9x im2col duplication).
        x_bands = jnp.stack(
            [x_padded[:, b * band_h: b * band_h + band_h + 2 * p]
             for b in range(nb)], axis=1)
        x_bands = x_bands.reshape(N * nb, band_h + 2 * p, W_pad, C_in)

    m = band_h * W
    # Explicit VMEM budget: v5e scoped default is 16 MiB; cap at 64 MiB (v7x physical).
    csize = jnp.dtype(compute_dtype).itemsize
    osize = jnp.dtype(out_dtype).itemsize
    need = (3 * (band_h + 2 * p) * W_pad * C_in * csize       # pipelined input blocks
            + 2 * C_out * m * osize                           # output blocks
            + 2 * C_out * m * 4                               # f32 accumulator headroom
            + 2 * (k * k * C_out * C_in * csize + C_out * 4)  # resident weights / bias
            + (1 << 20))
    vmem_limit = int(min(64 << 20, max(32 << 20, need)))

    out = pl.pallas_call(
        functools.partial(_conv_band_kernel, k=k, band_h=band_h, W=W),
        out_shape=jax.ShapeDtypeStruct((N, C_out, Hp * W), out_dtype),
        grid_spec=pltpu.PrefetchScalarGridSpec(
            num_scalar_prefetch=0,
            grid=(N, nb),
            in_specs=[
                # NOTE: if DMA is still exposed for thin bands, deepen the pipeline
                # here with pipeline_mode=pl.Buffered(3) (sweep knob).
                pl.BlockSpec((1, band_h + 2 * p, W_pad, C_in),
                             lambda n, b: (n * nb + b, 0, 0, 0)),
                pl.BlockSpec((k * k, C_out, C_in), lambda n, b: (0, 0, 0)),
                pl.BlockSpec((C_out, 1), lambda n, b: (0, 0)),
            ],
            out_specs=pl.BlockSpec((1, C_out, m), lambda n, b: (n, 0, b)),
        ),
        compiler_params=pltpu.CompilerParams(
            dimension_semantics=("parallel", "parallel"),
            vmem_limit_bytes=vmem_limit,
        ),
    )(x_bands, w_taps, b_eff)

    if Hp != H:
        out = out[:, :, :H * W]
    # (N, Cout, H*W) -> (N, Cout, H, W): pure reshape, no transpose pass.
    return out.reshape(N, C_out, H, W)


def _reference(x, weight, bias, gain=1.0):
    C_in, k = weight.shape[1], weight.shape[2]
    p = k // 2
    w = weight.astype(jnp.float32) * np.float32(1.0 / np.sqrt(C_in * k * k))
    y = jax.lax.conv_general_dilated(
        x.astype(jnp.float32), w, window_strides=(1, 1),
        padding=[(p, p), (p, p)], dimension_numbers=("NCHW", "OIHW", "NCHW"))
    return (y + bias.astype(jnp.float32)[None, :, None, None]) * np.float32(gain)


if __name__ == "__main__":
    key = jax.random.PRNGKey(0)
    k_x, k_w, k_x2 = jax.random.split(key, 3)

    # Small config consistent with Conv2dLayer(in_channels=4, out_channels=8, kernel_size=3).
    N, C_in, C_out, H, W, k = 2, 4, 8, 16, 16, 3
    x = jax.random.normal(k_x, (N, C_in, H, W), dtype=jnp.float32)
    weight = jax.random.normal(k_w, (C_out, C_in, k, k), dtype=jnp.float32)
    bias = jnp.zeros((C_out,), dtype=jnp.float32)

    fwd = jax.jit(conv2d_layer_forward,
                  static_argnames=("gain", "activation", "up", "down",
                                   "conv_clamp", "compute_dtype", "target_m"))

    # f32 compute path (matches module numerics exactly).
    y = jax.block_until_ready(fwd(x, weight, bias, gain=1.0))
    y_ref = _reference(x, weight, bias, gain=1.0)
    np.testing.assert_allclose(np.asarray(y), np.asarray(y_ref), rtol=1e-4, atol=1e-4)

    # bf16 compute path (perf mode: half the DMA bytes, full MXU rate), f32 accumulation.
    y_bf16 = jax.block_until_ready(
        fwd(x, weight, bias, gain=1.0, compute_dtype=jnp.bfloat16))
    np.testing.assert_allclose(np.asarray(y_bf16), np.asarray(y_ref), rtol=5e-2, atol=5e-2)

    # Larger spatial case exercising the multi-band (row-tiled) path.
    H2 = W2 = 64
    x2 = jax.random.normal(k_x2, (N, C_in, H2, W2), dtype=jnp.float32)
    y2 = jax.block_until_ready(fwd(x2, weight, bias, gain=1.0))
    y2_ref = _reference(x2, weight, bias, gain=1.0)
    np.testing.assert_allclose(np.asarray(y2), np.asarray(y2_ref), rtol=1e-4, atol=1e-4)

    print("KERNEL_OK")
</pallas_src>

<mosaic_0001>
module attributes {stable_mosaic.version = 11 : i64} {
  func.func @_conv_band_kernel(%arg0: i32, %arg1: i32, %arg2: memref<1x18x18x4xf32, #tpu.memory_space<vmem>>, %arg3: memref<9x8x4xf32, #tpu.memory_space<vmem>>, %arg4: memref<8x1xf32, #tpu.memory_space<vmem>>, %arg5: memref<1x8x256xf32, #tpu.memory_space<vmem>>) attributes {dimension_semantics = [#tpu.dimension_semantics<parallel>, #tpu.dimension_semantics<parallel>], iteration_bounds = array<i64: 2, 1>, scalar_prefetch = 0 : i64, scratch_operands = 0 : i64, tpu.core_type = #tpu.core_type<tc>, window_params = [{transform_indices = @transform_0, window_bounds = array<i64: 1, 18, 18, 4>}, {pipeline_mode = #tpu.pipeline_mode<synchronous>, transform_indices = @transform_1, window_bounds = array<i64: 9, 8, 4>}, {pipeline_mode = #tpu.pipeline_mode<synchronous>, transform_indices = @transform_2, window_bounds = array<i64: 8, 1>}, {transform_indices = @transform_3, window_bounds = array<i64: 1, 8, 256>}]} {
    %c0 = arith.constant 0 : index
    %c0_0 = arith.constant 0 : index
    %0 = vector.load %arg4[%c0, %c0_0] : memref<8x1xf32, #tpu.memory_space<vmem>>, vector<8x1xf32>
    %1 = vector.shape_cast %0 : vector<8x1xf32> to vector<8x1xf32>
    %2 = vector.broadcast %1 : vector<8x1xf32> to vector<8x256xf32>
    %c0_1 = arith.constant 0 : index
    %c0_2 = arith.constant 0 : index
    %c0_3 = arith.constant 0 : index
    %c0_4 = arith.constant 0 : index
    %3 = vector.load %arg2[%c0_1, %c0_2, %c0_3, %c0_4] : memref<1x18x18x4xf32, #tpu.memory_space<vmem>>, vector<1x16x16x4xf32>
    %4 = vector.shape_cast %3 : vector<1x16x16x4xf32> to vector<16x16x4xf32>
    %5 = vector.shape_cast %4 : vector<16x16x4xf32> to vector<256x4xf32>
    %c0_5 = arith.constant 0 : index
    %c0_6 = arith.constant 0 : index
    %c0_7 = arith.constant 0 : index
    %6 = vector.load %arg3[%c0_5, %c0_6, %c0_7] : memref<9x8x4xf32, #tpu.memory_space<vmem>>, vector<1x8x4xf32>
    %7 = vector.shape_cast %6 : vector<1x8x4xf32> to vector<8x4xf32>
    %cst = arith.constant dense<0.000000e+00> : vector<8x256xf32>
    %8 = tpu.matmul %7, %5, %cst {dimension_numbers = #tpu.dot_dimension_numbers<[1], [1], [0], [0], [0, 0, 1, 0], [], []>} : vector<8x4xf32>, vector<256x4xf32>, vector<8x256xf32> -> vector<8x256xf32>
    %9 = arith.addf %2, %8 : vector<8x256xf32>
    %c0_8 = arith.constant 0 : index
    %c0_9 = arith.constant 0 : index
    %c1 = arith.constant 1 : index
    %c0_10 = arith.constant 0 : index
    %10 = vector.load %arg2[%c0_8, %c0_9, %c1, %c0_10] : memref<1x18x18x4xf32, #tpu.memory_space<vmem>>, vector<1x16x16x4xf32>
    %11 = vector.shape_cast %10 : vector<1x16x16x4xf32> to vector<16x16x4xf32>
    %12 = vector.shape_cast %11 : vector<16x16x4xf32> to vector<256x4xf32>
    %c1_11 = arith.constant 1 : index
    %c0_12 = arith.constant 0 : index
    %c0_13 = arith.constant 0 : index
    %13 = vector.load %arg3[%c1_11, %c0_12, %c0_13] : memref<9x8x4xf32, #tpu.memory_space<vmem>>, vector<1x8x4xf32>
    %14 = vector.shape_cast %13 : vector<1x8x4xf32> to vector<8x4xf32>
    %cst_14 = arith.constant dense<0.000000e+00> : vector<8x256xf32>
    %15 = tpu.matmul %14, %12, %cst_14 {dimension_numbers = #tpu.dot_dimension_numbers<[1], [1], [0], [0], [0, 0, 1, 0], [], []>} : vector<8x4xf32>, vector<256x4xf32>, vector<8x256xf32> -> vector<8x256xf32>
    %16 = arith.addf %9, %15 : vector<8x256xf32>
    %c0_15 = arith.constant 0 : index
    %c0_16 = arith.constant 0 : index
    %c2 = arith.constant 2 : index
    %c0_17 = arith.constant 0 : index
    %17 = vector.load %arg2[%c0_15, %c0_16, %c2, %c0_17] : memref<1x18x18x4xf32, #tpu.memory_space<vmem>>, vector<1x16x16x4xf32>
    %18 = vector.shape_cast %17 : vector<1x16x16x4xf32> to vector<16x16x4xf32>
    %19 = vector.shape_cast %18 : vector<16x16x4xf32> to vector<256x4xf32>
    %c2_18 = arith.constant 2 : index
    %c0_19 = arith.constant 0 : index
    %c0_20 = arith.constant 0 : index
    %20 = vector.load %arg3[%c2_18, %c0_19, %c0_20] : memref<9x8x4xf32, #tpu.memory_space<vmem>>, vector<1x8x4xf32>
    %21 = vector.shape_cast %20 : vector<1x8x4xf32> to vector<8x4xf32>
    %cst_21 = arith.constant dense<0.000000e+00> : vector<8x256xf32>
    %22 = tpu.matmul %21, %19, %cst_21 {dimension_numbers = #tpu.dot_dimension_numbers<[1], [1], [0], [0], [0, 0, 1, 0], [], []>} : vector<8x4xf32>, vector<256x4xf32>, vector<8x256xf32> -> vector<8x256xf32>
    %23 = arith.addf %16, %22 : vector<8x256xf32>
    %c0_22 = arith.constant 0 : index
    %c1_23 = arith.constant 1 : index
    %c0_24 = arith.constant 0 : index
    %c0_25 = arith.constant 0 : index
    %24 = vector.load %arg2[%c0_22, %c1_23, %c0_24, %c0_25] : memref<1x18x18x4xf32, #tpu.memory_space<vmem>>, vector<1x16x16x4xf32>
    %25 = vector.shape_cast %24 : vector<1x16x16x4xf32> to vector<16x16x4xf32>
    %26 = vector.shape_cast %25 : vector<16x16x4xf32> to vector<256x4xf32>
    %c3 = arith.constant 3 : index
    %c0_26 = arith.constant 0 : index
    %c0_27 = arith.constant 0 : index
    %27 = vector.load %arg3[%c3, %c0_26, %c0_27] : memref<9x8x4xf32, #tpu.memory_space<vmem>>, vector<1x8x4xf32>
    %28 = vector.shape_cast %27 : vector<1x8x4xf32> to vector<8x4xf32>
    %cst_28 = arith.constant dense<0.000000e+00> : vector<8x256xf32>
    %29 = tpu.matmul %28, %26, %cst_28 {dimension_numbers = #tpu.dot_dimension_numbers<[1], [1], [0], [0], [0, 0, 1, 0], [], []>} : vector<8x4xf32>, vector<256x4xf32>, vector<8x256xf32> -> vector<8x256xf32>
    %30 = arith.addf %23, %29 : vector<8x256xf32>
    %c0_29 = arith.constant 0 : index
    %c1_30 = arith.constant 1 : index
    %c1_31 = arith.constant 1 : index
    %c0_32 = arith.constant 0 : index
    %31 = vector.load %arg2[%c0_29, %c1_30, %c1_31, %c0_32] : memref<1x18x18x4xf32, #tpu.memory_space<vmem>>, vector<1x16x16x4xf32>
    %32 = vector.shape_cast %31 : vector<1x16x16x4xf32> to vector<16x16x4xf32>
    %33 = vector.shape_cast %32 : vector<16x16x4xf32> to vector<256x4xf32>
    %c4 = arith.constant 4 : index
    %c0_33 = arith.constant 0 : index
    %c0_34 = arith.constant 0 : index
    %34 = vector.load %arg3[%c4, %c0_33, %c0_34] : memref<9x8x4xf32, #tpu.memory_space<vmem>>, vector<1x8x4xf32>
    %35 = vector.shape_cast %34 : vector<1x8x4xf32> to vector<8x4xf32>
    %cst_35 = arith.constant dense<0.000000e+00> : vector<8x256xf32>
    %36 = tpu.matmul %35, %33, %cst_35 {dimension_numbers = #tpu.dot_dimension_numbers<[1], [1], [0], [0], [0, 0, 1, 0], [], []>} : vector<8x4xf32>, vector<256x4xf32>, vector<8x256xf32> -> vector<8x256xf32>
    %37 = arith.addf %30, %36 : vector<8x256xf32>
    %c0_36 = arith.constant 0 : index
    %c1_37 = arith.constant 1 : index
    %c2_38 = arith.constant 2 : index
    %c0_39 = arith.constant 0 : index
    %38 = vector.load %arg2[%c0_36, %c1_37, %c2_38, %c0_39] : memref<1x18x18x4xf32, #tpu.memory_space<vmem>>, vector<1x16x16x4xf32>
    %39 = vector.shape_cast %38 : vector<1x16x16x4xf32> to vector<16x16x4xf32>
    %40 = vector.shape_cast %39 : vector<16x16x4xf32> to vector<256x4xf32>
    %c5 = arith.constant 5 : index
    %c0_40 = arith.constant 0 : index
    %c0_41 = arith.constant 0 : index
    %41 = vector.load %arg3[%c5, %c0_40, %c0_41] : memref<9x8x4xf32, #tpu.memory_space<vmem>>, vector<1x8x4xf32>
    %42 = vector.shape_cast %41 : vector<1x8x4xf32> to vector<8x4xf32>
    %cst_42 = arith.constant dense<0.000000e+00> : vector<8x256xf32>
    %43 = tpu.matmul %42, %40, %cst_42 {dimension_numbers = #tpu.dot_dimension_numbers<[1], [1], [0], [0], [0, 0, 1, 0], [], []>} : vector<8x4xf32>, vector<256x4xf32>, vector<8x256xf32> -> vector<8x256xf32>
    %44 = arith.addf %37, %43 : vector<8x256xf32>
    %c0_43 = arith.constant 0 : index
    %c2_44 = arith.constant 2 : index
    %c0_45 = arith.constant 0 : index
    %c0_46 = arith.constant 0 : index
    %45 = vector.load %arg2[%c0_43, %c2_44, %c0_45, %c0_46] : memref<1x18x18x4xf32, #tpu.memory_space<vmem>>, vector<1x16x16x4xf32>
    %46 = vector.shape_cast %45 : vector<1x16x16x4xf32> to vector<16x16x4xf32>
    %47 = vector.shape_cast %46 : vector<16x16x4xf32> to vector<256x4xf32>
    %c6 = arith.constant 6 : index
    %c0_47 = arith.constant 0 : index
    %c0_48 = arith.constant 0 : index
    %48 = vector.load %arg3[%c6, %c0_47, %c0_48] : memref<9x8x4xf32, #tpu.memory_space<vmem>>, vector<1x8x4xf32>
    %49 = vector.shape_cast %48 : vector<1x8x4xf32> to vector<8x4xf32>
    %cst_49 = arith.constant dense<0.000000e+00> : vector<8x256xf32>
    %50 = tpu.matmul %49, %47, %cst_49 {dimension_numbers = #tpu.dot_dimension_numbers<[1], [1], [0], [0], [0, 0, 1, 0], [], []>} : vector<8x4xf32>, vector<256x4xf32>, vector<8x256xf32> -> vector<8x256xf32>
    %51 = arith.addf %44, %50 : vector<8x256xf32>
    %c0_50 = arith.constant 0 : index
    %c2_51 = arith.constant 2 : index
    %c1_52 = arith.constant 1 : index
    %c0_53 = arith.constant 0 : index
    %52 = vector.load %arg2[%c0_50, %c2_51, %c1_52, %c0_53] : memref<1x18x18x4xf32, #tpu.memory_space<vmem>>, vector<1x16x16x4xf32>
    %53 = vector.shape_cast %52 : vector<1x16x16x4xf32> to vector<16x16x4xf32>
    %54 = vector.shape_cast %53 : vector<16x16x4xf32> to vector<256x4xf32>
    %c7 = arith.constant 7 : index
    %c0_54 = arith.constant 0 : index
    %c0_55 = arith.constant 0 : index
    %55 = vector.load %arg3[%c7, %c0_54, %c0_55] : memref<9x8x4xf32, #tpu.memory_space<vmem>>, vector<1x8x4xf32>
    %56 = vector.shape_cast %55 : vector<1x8x4xf32> to vector<8x4xf32>
    %cst_56 = arith.constant dense<0.000000e+00> : vector<8x256xf32>
    %57 = tpu.matmul %56, %54, %cst_56 {dimension_numbers = #tpu.dot_dimension_numbers<[1], [1], [0], [0], [0, 0, 1, 0], [], []>} : vector<8x4xf32>, vector<256x4xf32>, vector<8x256xf32> -> vector<8x256xf32>
    %58 = arith.addf %51, %57 : vector<8x256xf32>
    %c0_57 = arith.constant 0 : index
    %c2_58 = arith.constant 2 : index
    %c2_59 = arith.constant 2 : index
    %c0_60 = arith.constant 0 : index
    %59 = vector.load %arg2[%c0_57, %c2_58, %c2_59, %c0_60] : memref<1x18x18x4xf32, #tpu.memory_space<vmem>>, vector<1x16x16x4xf32>
    %60 = vector.shape_cast %59 : vector<1x16x16x4xf32> to vector<16x16x4xf32>
    %61 = vector.shape_cast %60 : vector<16x16x4xf32> to vector<256x4xf32>
    %c8 = arith.constant 8 : index
    %c0_61 = arith.constant 0 : index
    %c0_62 = arith.constant 0 : index
    %62 = vector.load %arg3[%c8, %c0_61, %c0_62] : memref<9x8x4xf32, #tpu.memory_space<vmem>>, vector<1x8x4xf32>
    %63 = vector.shape_cast %62 : vector<1x8x4xf32> to vector<8x4xf32>
    %cst_63 = arith.constant dense<0.000000e+00> : vector<8x256xf32>
    %64 = tpu.matmul %63, %61, %cst_63 {dimension_numbers = #tpu.dot_dimension_numbers<[1], [1], [0], [0], [0, 0, 1, 0], [], []>} : vector<8x4xf32>, vector<256x4xf32>, vector<8x256xf32> -> vector<8x256xf32>
    %65 = arith.addf %58, %64 : vector<8x256xf32>
    %c0_64 = arith.constant 0 : index
    %c0_65 = arith.constant 0 : index
    %c0_66 = arith.constant 0 : index
    %66 = vector.load %arg5[%c0_64, %c0_65, %c0_66] : memref<1x8x256xf32, #tpu.memory_space<vmem>>, vector<1x8x256xf32>
    %67 = vector.shape_cast %66 : vector<1x8x256xf32> to vector<8x256xf32>
    %68 = vector.shape_cast %65 : vector<8x256xf32> to vector<1x8x256xf32>
    tpu.vector_store %arg5[%c0_64, %c0_65, %c0_66], %68 {strides = array<i32>} : memref<1x8x256xf32, #tpu.memory_space<vmem>>, vector<1x8x256xf32>,
    return
  }
  func.func @transform_0(%arg0: i32, %arg1: i32) -> (i32, i32, i32, i32) {
    %c1_i32 = arith.constant 1 : i32
    %0 = arith.muli %arg0, %c1_i32 : i32
    %1 = arith.addi %0, %arg1 : i32
    %c0_i32 = arith.constant 0 : i32
    %c0_i32_0 = arith.constant 0 : i32
    %c0_i32_1 = arith.constant 0 : i32
    %c0_i32_2 = arith.constant 0 : i32
    return %1, %c0_i32, %c0_i32_0, %c0_i32_1 : i32, i32, i32, i32
  }
  func.func @transform_1(%arg0: i32, %arg1: i32) -> (i32, i32, i32) {
    %c0_i32 = arith.constant 0 : i32
    %c0_i32_0 = arith.constant 0 : i32
    %c0_i32_1 = arith.constant 0 : i32
    %c0_i32_2 = arith.constant 0 : i32
    return %c0_i32, %c0_i32_0, %c0_i32_1 : i32, i32, i32
  }
  func.func @transform_2(%arg0: i32, %arg1: i32) -> (i32, i32) {
    %c0_i32 = arith.constant 0 : i32
    %c0_i32_0 = arith.constant 0 : i32
    %c0_i32_1 = arith.constant 0 : i32
    return %c0_i32, %c0_i32_0 : i32, i32
  }
  func.func @transform_3(%arg0: i32, %arg1: i32) -> (i32, i32, i32) {
    %c0_i32 = arith.constant 0 : i32
    %c0_i32_0 = arith.constant 0 : i32
    return %arg0, %c0_i32, %arg1 : i32, i32, i32
  }
}

</mosaic_0001>

<bundles_post_ra>
// kernel: conv2d_layer_forward.1
= control target key start
LH: loop header
LB: loop body
LE: loop exit
PB: predicated region body
PF: predicated region fallthrough
CT: control target
= control target key end

     0   :  { %s3032_s12 = smov 0   ;;  %s3034_s13 = smov 0   ;;  %s4015_s0 = inlined_call_operand.vmem [shape: f32[2,18,18,4], index: 0, kind: input, shape index: {}]   ;;  %s4016_s1 = inlined_call_operand.vmem [shape: f32[9,8,4], index: 1, kind: input, shape index: {}]   ;;  %s4017_s2 = inlined_call_operand.vmem [shape: f32[8,1], index: 2, kind: input, shape index: {}]   ;;  %s4018_s3 = inlined_call_operand.vmem [shape: f32[2,8,256], index: 3, kind: output, shape index: {}]  }
   0x1   :  { %s3036_s14 = smov 0  }
   0x2 LB: > { %s25_s15 = sadd.s32 1, %s3005_s13  ;;  %p2150_p0 = scmp.ge.s32.totalorder %s3009_s14, 1  ;;  %s3009_s14 = sphi %s3036_s14, %s13_s14   ;;  %s3005_s13 = sphi %s3034_s13, %s4146_s13   ;;  %s3001_s12 = sphi %s3032_s12, %s4145_s12  }
   0x3   : > { %p27_p1 = scmp.ge.s32.totalorder %s25_s15, 2  ;;  %p155_p2 = scmp.lt.s32.totalorder %s3009_s14, 3 }
   0x5   : > { %s4148_s15 = smov (%p27_p1, %s25_s15), 0  ;;  %p156_p3 = pnand %p2150_p0, %p155_p2 }
   0x7   : > { %159 = sbr.rel (%p156_p3) target bundleno = 537 (0x219), region = 32 }
   0xc   : > { %p185_p4 = scmp.lt.s32.totalorder %s3001_s12, 1  ;;  %vm240_vm0 = vcmask 31744   ;;  %v3053_v0 = vld [vmem:[%s4016_s1] sm:$0xff]  ;;  %v3058_v1 = vld [vmem:[%s4016_s1 + $0x8] sm:$0xff]  ;;  %v3011_v12 = vmov 0  }
   0xd   : > { %2686 = vmatprep.mubr.msk.f32.mxu0 %vm240_vm0, %v3053_v0  ;;  %2720 = vmatprep.mubr.msk.f32.mxu1 %vm240_vm0, %v3058_v1  ;;  %v201_v41 = vld [vmem:[%s4017_s2] sm:$0xff] }
   0xe   : > { %s4150_s12 = smov (!%p185_p4, %s3001_s12), 1  ;;  %2986 = vset.pattern.permute.xlu0 %v3011_v12 }
   0xf   : > { %s2960_s20 = smul.u32 432, %s4150_s12  ;;  %204 = vperm.xlu0 %2986, %v201_v41   ;;  %s2653_s17 = sshll.u32 %s4150_s12, 4 }
  0x11   : > { %s3070_s23 = scalar_lea.vmem %s4015_s0, %s2960_s20  ;;  %s199_s20 = scalar_lea.vmem %s4018_s3, %s2653_s17 }
  0x12   : > { %v3073_v2 = vld [vmem:[%s3070_s23 + $0x170] sm:$0xff]  ;;  %v3089_v6 = vld [vmem:[%s3070_s23 + $0x168] sm:$0xff]  ;;  %v3109_v10 = vld [vmem:[%s3070_s23 + $0x158] sm:$0xff] }
  0x13   : > { %4063 = vst [vmem:[#allocation2_spill] sm:$0xff] %v3073_v2  ;;  %v3076_v3 = vld [vmem:[%s3070_s23 + $0xb0] sm:$0xff]  ;;  %2654 = vmatprep.subr.msk.mxu0 %vm240_vm0, %v3073_v2  ;;  %4065 = vst [vmem:[#allocation4_spill] sm:$0xff] %v3089_v6  ;;  %v3101_v8 = vld [vmem:[%s3070_s23 + $0xa8] sm:$0xff] }
  0x14   : > { %4064 = vst [vmem:[#allocation3_spill] sm:$0xff] %v3076_v3  ;;  %v3079_v4 = vld [vmem:[%s3070_s23 + $0x171] sm:$0xff]  ;;  %2655 = vmatpush3.xpose.msk.msra.mxu0 %vm240_vm0, %v3076_v3  ;;  %v3096_v7 = vld [vmem:[%s3070_s23 + $0x169] sm:$0xff]  ;;  %4066 = vst [vmem:[#allocation5_spill] sm:$0xff] %v3101_v8 }
  0x15   : > { %2688 = vmatprep.subr.msk.mxu1 %vm240_vm0, %v3079_v4  ;;  %v3086_v5 = vld [vmem:[%s3070_s23 + $0xb1] sm:$0xff]  ;;  %2656 = vmatprep.subr.msk.mxu0 %vm240_vm0, %v3089_v6  ;;  %v3106_v9 = vld [vmem:[%s3070_s23 + $0xa9] sm:$0xff]  ;;  %4067 = vst [vmem:[#allocation6_spill] sm:$0xff] %v3109_v10  ;;  %v3112_v11 = vld [vmem:[%s3070_s23 + $0x159] sm:$0xff] }
  0x16   : > { %2689 = vmatpush3.xpose.msk.msra.mxu1 %vm240_vm0, %v3086_v5  ;;  %v3121_v13 = vld [vmem:[%s3070_s23 + $0x98] sm:$0xff]  ;;  %v3129_v15 = vld [vmem:[%s3070_s23 + $0x150] sm:$0xff]  ;;  %v3149_v19 = vld [vmem:[%s3070_s23 + $0x140] sm:$0xff] }
  0x17   : > { %2690 = vmatprep.subr.msk.mxu1 %vm240_vm0, %v3096_v7  ;;  %4068 = vst [vmem:[#allocation7_spill] sm:$0xff] %v3121_v13  ;;  %v3126_v14 = vld [vmem:[%s3070_s23 + $0x99] sm:$0xff]  ;;  %4069 = vst [vmem:[#allocation8_spill] sm:$0xff] %v3129_v15  ;;  %v3132_v16 = vld [vmem:[%s3070_s23 + $0x151] sm:$0xff] }
  0x18   : > { %2657 = vmatpush3.xpose.msk.msra.mxu0 %vm240_vm0, %v3101_v8  ;;  %v3141_v17 = vld [vmem:[%s3070_s23 + $0x90] sm:$0xff]  ;;  %4071 = vst [vmem:[#allocation10_spill] sm:$0xff] %v3149_v19  ;;  %v3152_v20 = vld [vmem:[%s3070_s23 + $0x141] sm:$0xff]  ;;  %v3169_v23 = vld [vmem:[%s3070_s23 + $0x138] sm:$0xff] }
  0x19   : > { %2658 = vmatprep.subr.msk.mxu0 %vm240_vm0, %v3109_v10  ;;  %4070 = vst [vmem:[#allocation9_spill] sm:$0xff] %v3141_v17  ;;  %v3146_v18 = vld [vmem:[%s3070_s23 + $0x91] sm:$0xff]  ;;  %v3161_v21 = vld [vmem:[%s3070_s23 + $0x80] sm:$0xff]  ;;  %4073 = vst [vmem:[#allocation12_spill] sm:$0xff] %v3169_v23 }
  0x1a   : > { %2691 = vmatpush3.xpose.msk.msra.mxu1 %vm240_vm0, %v3106_v9  ;;  %4072 = vst [vmem:[#allocation11_spill] sm:$0xff] %v3161_v21  ;;  %v3166_v22 = vld [vmem:[%s3070_s23 + $0x81] sm:$0xff]  ;;  %v3172_v24 = vld [vmem:[%s3070_s23 + $0x139] sm:$0xff]  ;;  %v3192_v28 = vld [vmem:[%s3070_s23 + $0x129] sm:$0xff] }
  0x1b   : > { %2692 = vmatprep.subr.msk.mxu1 %vm240_vm0, %v3112_v11  ;;  %v3181_v25 = vld [vmem:[%s3070_s23 + $0x78] sm:$0xff]  ;;  %v3189_v27 = vld [vmem:[%s3070_s23 + $0x128] sm:$0xff]  ;;  %v3209_v31 = vld [vmem:[%s3070_s23 + $0x120] sm:$0xff] }
  0x1c   : > { %2659 = vmatpush3.xpose.msk.msra.mxu0 %vm240_vm0, %v3121_v13  ;;  %4074 = vst [vmem:[#allocation13_spill] sm:$0xff] %v3181_v25  ;;  %v3186_v26 = vld [vmem:[%s3070_s23 + $0x79] sm:$0xff]  ;;  %4075 = vst [vmem:[#allocation14_spill] sm:$0xff] %v3189_v27  ;;  %v3201_v29 = vld [vmem:[%s3070_s23 + $0x68] sm:$0xff] }
  0x1d   : > { %2660 = vmatprep.subr.msk.mxu0 %vm240_vm0, %v3129_v15  ;;  %4076 = vst [vmem:[#allocation15_spill] sm:$0xff] %v3201_v29  ;;  %v3206_v30 = vld [vmem:[%s3070_s23 + $0x69] sm:$0xff]  ;;  %4077 = vst [vmem:[#allocation16_spill] sm:$0xff] %v3209_v31  ;;  %v3212_v32 = vld [vmem:[%s3070_s23 + $0x121] sm:$0xff] }
  0x1e   : > { %2693 = vmatpush3.xpose.msk.msra.mxu1 %vm240_vm0, %v3126_v14  ;;  %v3221_v33 = vld [vmem:[%s3070_s23 + $0x60] sm:$0xff]  ;;  %v3229_v35 = vld [vmem:[%s3070_s23 + $0x110] sm:$0xff]  ;;  %v3249_v39 = vld [vmem:[%s3070_s23 + $0x108] sm:$0xff] }
  0x1f   : > { %2694 = vmatprep.subr.msk.mxu1 %vm240_vm0, %v3132_v16  ;;  %4078 = vst [vmem:[#allocation17_spill] sm:$0xff] %v3221_v33  ;;  %v3226_v34 = vld [vmem:[%s3070_s23 + $0x61] sm:$0xff]  ;;  %4079 = vst [vmem:[#allocation18_spill] sm:$0xff] %v3229_v35  ;;  %v3232_v36 = vld [vmem:[%s3070_s23 + $0x111] sm:$0xff] }
  0x20   : > { %2661 = vmatpush3.xpose.msk.msra.mxu0 %vm240_vm0, %v3141_v17  ;;  %v3241_v37 = vld [vmem:[%s3070_s23 + $0x50] sm:$0xff]  ;;  %4081 = vst [vmem:[#allocation20_spill] sm:$0xff] %v3249_v39  ;;  %v3264_v42 = vld [vmem:[%s3070_s23 + $0x48] sm:$0xff]  ;;  %v3272_v44 = vld [vmem:[%s3070_s23 + $0xf8] sm:$0xff] }
  0x21   : > { %2662 = vmatprep.subr.msk.mxu0 %vm240_vm0, %v3149_v19  ;;  %4080 = vst [vmem:[#allocation19_spill] sm:$0xff] %v3241_v37  ;;  %v3246_v38 = vld [vmem:[%s3070_s23 + $0x51] sm:$0xff]  ;;  %v3252_v40 = vld [vmem:[%s3070_s23 + $0x109] sm:$0xff]  ;;  %4082 = vst [vmem:[#allocation21_spill] sm:$0xff] %v3264_v42 }
  0x22   : > { %2695 = vmatpush3.xpose.msk.msra.mxu1 %vm240_vm0, %v3146_v18  ;;  %v3269_v43 = vld [vmem:[%s3070_s23 + $0x49] sm:$0xff]  ;;  %4083 = vst [vmem:[#allocation22_spill] sm:$0xff] %v3272_v44  ;;  %v3275_v45 = vld [vmem:[%s3070_s23 + $0xf9] sm:$0xff]  ;;  %v3295_v49 = vld [vmem:[%s3070_s23 + $0xf1] sm:$0xff] }
  0x23   : > { %2696 = vmatprep.subr.msk.mxu1 %vm240_vm0, %v3152_v20  ;;  %v3284_v46 = vld [vmem:[%s3070_s23 + $0x38] sm:$0xff]  ;;  %v3292_v48 = vld [vmem:[%s3070_s23 + $0xf0] sm:$0xff]  ;;  %v3312_v52 = vld [vmem:[%s3070_s23 + $0xe0] sm:$0xff] }
  0x24   : > { %2663 = vmatpush3.xpose.msk.msra.mxu0 %vm240_vm0, %v3161_v21  ;;  %4084 = vst [vmem:[#allocation23_spill] sm:$0xff] %v3284_v46  ;;  %v3289_v47 = vld [vmem:[%s3070_s23 + $0x39] sm:$0xff]  ;;  %4085 = vst [vmem:[#allocation24_spill] sm:$0xff] %v3292_v48  ;;  %v3304_v50 = vld [vmem:[%s3070_s23 + $0x30] sm:$0xff] }
  0x25   : > { %2664 = vmatprep.subr.msk.mxu0 %vm240_vm0, %v3169_v23  ;;  %4086 = vst [vmem:[#allocation25_spill] sm:$0xff] %v3304_v50  ;;  %v3309_v51 = vld [vmem:[%s3070_s23 + $0x31] sm:$0xff]  ;;  %v3315_v53 = vld [vmem:[%s3070_s23 + $0xe1] sm:$0xff]  ;;  %v3335_v57 = vld [vmem:[%s3070_s23 + $0xd9] sm:$0xff] }
  0x26   : > { %2697 = vmatpush3.xpose.msk.msra.mxu1 %vm240_vm0, %v3166_v22  ;;  %4087 = vst [vmem:[#allocation26_spill] sm:$0xff] %v3309_v51  ;;  %4088 = vst [vmem:[#allocation27_spill] sm:$0xff] %v3315_v53  ;;  %v3324_v54 = vld [vmem:[%s3070_s23 + $0x20] sm:$0xff]  ;;  %v3332_v56 = vld [vmem:[%s3070_s23 + $0xd8] sm:$0xff] }
  0x27   : > { %2698 = vmatprep.subr.msk.mxu1 %vm240_vm0, %v3172_v24  ;;  %v3329_v55 = vld [vmem:[%s3070_s23 + $0x21] sm:$0xff]  ;;  %4090 = vst [vmem:[#allocation29_spill] sm:$0xff] %v3335_v57  ;;  %v3344_v58 = vld [vmem:[%s3070_s23 + $0x18] sm:$0xff]  ;;  %v3355_v61 = vld [vmem:[%s3070_s23 + $0xc9] sm:$0xff] }
  0x28   : > { %2665 = vmatpush3.xpose.msk.msra.mxu0 %vm240_vm0, %v3181_v25  ;;  %4089 = vst [vmem:[#allocation28_spill] sm:$0xff] %v3329_v55  ;;  %v3349_v59 = vld [vmem:[%s3070_s23 + $0x19] sm:$0xff]  ;;  %v3352_v60 = vld [vmem:[%s3070_s23 + $0xc8] sm:$0xff] }
  0x29   : > { %2666 = vmatprep.subr.msk.mxu0 %vm240_vm0, %v3189_v27  ;;  %4091 = vst [vmem:[#allocation30_spill] sm:$0xff] %v3349_v59  ;;  %4092 = vst [vmem:[#allocation31_spill] sm:$0xff] %v3352_v60  ;;  %v208_v62 = vld [vmem:[%s3070_s23 + $0x8] sm:$0xff]  ;;  %v3368_v12 = vld [vmem:[%s3070_s23 + $0xc0] sm:$0xff] }
  0x2a   : > { %2699 = vmatpush3.xpose.msk.msra.mxu1 %vm240_vm0, %v3186_v26  ;;  %v414_v63 = vld [vmem:[%s3070_s23 + $0x9] sm:$0xff]  ;;  %4093 = vst [vmem:[#allocation32_spill] sm:$0xff] %v3368_v12  ;;  %v3371_v41 = vld [vmem:[%s3070_s23 + $0xc1] sm:$0xff] }
  0x2b   : > { %2700 = vmatprep.subr.msk.mxu1 %vm240_vm0, %v3192_v28 }
  0x2c   : > { %2667 = vmatpush3.xpose.msk.msra.mxu0 %vm240_vm0, %v3201_v29 }
  0x2d   : > { %2668 = vmatprep.subr.msk.mxu0 %vm240_vm0, %v3209_v31 }
  0x2e   : > { %2701 = vmatpush3.xpose.msk.msra.mxu1 %vm240_vm0, %v3206_v30 }
  0x2f   : > { %2702 = vmatprep.subr.msk.mxu1 %vm240_vm0, %v3212_v32 }
  0x30   : > { %2669 = vmatpush3.xpose.msk.msra.mxu0 %vm240_vm0, %v3221_v33 }
  0x31   : > { %2670 = vmatprep.subr.msk.mxu0 %vm240_vm0, %v3229_v35 }
  0x32   : > { %2703 = vmatpush3.xpose.msk.msra.mxu1 %vm240_vm0, %v3226_v34 }
  0x33   : > { %2704 = vmatprep.subr.msk.mxu1 %vm240_vm0, %v3232_v36 }
  0x34   : > { %2671 = vmatpush3.xpose.msk.msra.mxu0 %vm240_vm0, %v3241_v37 }
  0x35   : > { %2672 = vmatprep.subr.msk.mxu0 %vm240_vm0, %v3249_v39 }
  0x36   : > { %2705 = vmatpush3.xpose.msk.msra.mxu1 %vm240_vm0, %v3246_v38 }
  0x37   : > { %2706 = vmatprep.subr.msk.mxu1 %vm240_vm0, %v3252_v40 }
  0x38   : > { %2673 = vmatpush3.xpose.msk.msra.mxu0 %vm240_vm0, %v3264_v42 }
  0x39   : > { %2674 = vmatprep.subr.msk.mxu0 %vm240_vm0, %v3272_v44 }
  0x3a   : > { %2707 = vmatpush3.xpose.msk.msra.mxu1 %vm240_vm0, %v3269_v43 }
  0x3b   : > { %2708 = vmatprep.subr.msk.mxu1 %vm240_vm0, %v3275_v45 }
  0x3c   : > { %2675 = vmatpush3.xpose.msk.msra.mxu0 %vm240_vm0, %v3284_v46 }
  0x3d   : > { %2676 = vmatprep.subr.msk.mxu0 %vm240_vm0, %v3292_v48 }
  0x3e   : > { %2709 = vmatpush3.xpose.msk.msra.mxu1 %vm240_vm0, %v3289_v47 }
  0x3f   : > { %2710 = vmatprep.subr.msk.mxu1 %vm240_vm0, %v3295_v49 }
  0x40   : > { %2677 = vmatpush3.xpose.msk.msra.mxu0 %vm240_vm0, %v3304_v50 }
  0x41   : > { %2678 = vmatprep.subr.msk.mxu0 %vm240_vm0, %v3312_v52 }
  0x42   : > { %2711 = vmatpush3.xpose.msk.msra.mxu1 %vm240_vm0, %v3309_v51  ;;  %v3400_v51 = vld [vmem:[%s3070_s23 + $0x180] sm:$0xff] }
  0x43   : > { %2712 = vmatprep.subr.msk.mxu1 %vm240_vm0, %v3315_v53  ;;  %v3385_v53 = vld [vmem:[%s3070_s23 + $0x188] sm:$0xff]  ;;  %4095 = vst [vmem:[#allocation34_spill] sm:$0xff] %v3400_v51 }
  0x44   : > { %2679 = vmatpush3.xpose.msk.msra.mxu0 %vm240_vm0, %v3324_v54  ;;  %4094 = vst [vmem:[#allocation33_spill] sm:$0xff] %v3385_v53 }
  0x45   : > { %2680 = vmatprep.subr.msk.mxu0 %vm240_vm0, %v3332_v56 }
  0x46   : > { %2713 = vmatpush3.xpose.msk.msra.mxu1 %vm240_vm0, %v3329_v55  ;;  %v3382_v55 = vld [vmem:[%s3070_s23 + $0x172] sm:$0xff] }
  0x47   : > { %2714 = vmatprep.subr.msk.mxu1 %vm240_vm0, %v3335_v57  ;;  %v413_v57 = vld [vmem:[%s3070_s23 + $0x1] sm:$0xff] }
  0x48   : > { %2681 = vmatpush3.xpose.msk.msra.mxu0 %vm240_vm0, %v3344_v58 }
  0x49   : > { %2682 = vmatprep.subr.msk.mxu0 %vm240_vm0, %v3352_v60 }
  0x4a   : > { %2715 = vmatpush3.xpose.msk.msra.mxu1 %vm240_vm0, %v3349_v59  ;;  %v207_v59 = vld [vmem:[%s3070_s23] sm:$0xff] }
  0x4b   : > { %2716 = vmatprep.subr.msk.mxu1 %vm240_vm0, %v3355_v61 }
  0x4c   : > { %2683 = vmatpush3.xpose.msk.msra.mxu0 %vm240_vm0, %v208_v62  ;;  %v3392_v62 = vld [vmem:[%s3070_s23 + $0xb2] sm:$0xff] }
  0x4d   : > { %2684 = vmatprep.subr.msk.mxu0 %vm240_vm0, %v3368_v12 }
  0x4e   : > { %2717 = vmatpush3.xpose.msk.msra.mxu1 %vm240_vm0, %v414_v63  ;;  %v3397_v63 = vld [vmem:[%s3070_s23 + $0x16a] sm:$0xff] }
  0x4f   : > { %2718 = vmatprep.subr.msk.mxu1 %vm240_vm0, %v3371_v41 }
  0x50   : > { %2685 = vmatpush3.xpose.msk.msra.mxu0 %vm240_vm0, %v207_v59  ;;  %v3414_v59 = vld [vmem:[%s4016_s1 + $0x18] sm:$0xff] }
  0x51   : > { %2722 = vmatprep.subr.msk.mxu0 %vm240_vm0, %v3382_v55 }
  0x52   : > { %2719 = vmatpush3.xpose.msk.msra.mxu1 %vm240_vm0, %v413_v57  ;;  %v3409_v57 = vld [vmem:[%s4016_s1 + $0x10] sm:$0xff] }
  0x53   : > { %2756 = vmatprep.subr.msk.mxu1 %vm240_vm0, %v3385_v53  ;;  %2687 = vmatmul.mubr.msk.f32.vlgmr.msra.gmra.mxu0 %vm240_vm0, %v3053_v0  ;;  %v3423_v0 = vld [vmem:[%s3070_s23 + $0xaa] sm:$0xff]  ;;  %v3460_v53 = vld [vmem:[%s3070_s23 + $0x142] sm:$0xff] }
  0x54   : > { %2723 = vmatpush3.xpose.msk.msra.mxu0 %vm240_vm0, %v3392_v62  ;;  %2754 = vmatprep.mubr.msk.f32.mxu0 %vm240_vm0, %v3409_v57 }
  0x55   : > { %2721 = vmatmul.mubr.msk.f32.vlgmr.msra.gmra.mxu1 %vm240_vm0, %v3058_v1  ;;  %2724 = vmatprep.subr.msk.mxu0 %vm240_vm0, %v3397_v63  ;;  %v3428_v1 = vld [vmem:[%s3070_s23 + $0x15a] sm:$0xff] }
  0x56   : > { %2757 = vmatpush3.xpose.msk.msra.mxu1 %vm240_vm0, %v3352_v60  ;;  %2788 = vmatprep.mubr.msk.f32.mxu1 %vm240_vm0, %v3414_v59  ;;  %v3446_v60 = vld [vmem:[%s3070_s23 + $0x152] sm:$0xff] }
  0x57   : > { %2758 = vmatprep.subr.msk.mxu1 %vm240_vm0, %v3400_v51  ;;  %v3441_v51 = vld [vmem:[%s3070_s23 + $0x9a] sm:$0xff] }
  0x58   : > { %2725 = vmatpush3.xpose.msk.msra.mxu0 %vm240_vm0, %v3423_v0 }
  0x59   : > { %2726 = vmatprep.subr.msk.mxu0 %vm240_vm0, %v3428_v1 }
  0x5a   : > { %2759 = vmatpush3.xpose.msk.msra.mxu1 %vm240_vm0, %v3368_v12  ;;  %v3455_v12 = vld [vmem:[%s3070_s23 + $0x92] sm:$0xff] }
  0x5b   : > { %2760 = vmatprep.subr.msk.mxu1 %vm240_vm0, %v3073_v2  ;;  %v3474_v2 = vld [vmem:[%s3070_s23 + $0x13a] sm:$0xff] }
  0x5c   : > { %2727 = vmatpush3.xpose.msk.msra.mxu0 %vm240_vm0, %v3441_v51 }
  0x5d   : > { %2728 = vmatprep.subr.msk.mxu0 %vm240_vm0, %v3446_v60 }
  0x5e   : > { %2761 = vmatpush3.xpose.msk.msra.mxu1 %vm240_vm0, %v3076_v3  ;;  %v3469_v3 = vld [vmem:[%s3070_s23 + $0x82] sm:$0xff] }
  0x5f   : > { %2762 = vmatprep.subr.msk.mxu1 %vm240_vm0, %v3089_v6  ;;  %v3488_v6 = vld [vmem:[%s3070_s23 + $0x12a] sm:$0xff] }
  0x60   : > { %2729 = vmatpush3.xpose.msk.msra.mxu0 %vm240_vm0, %v3455_v12 }
  0x61   : > { %2730 = vmatprep.subr.msk.mxu0 %vm240_vm0, %v3460_v53 }
  0x62   : > { %2763 = vmatpush3.xpose.msk.msra.mxu1 %vm240_vm0, %v3101_v8  ;;  %v3483_v8 = vld [vmem:[%s3070_s23 + $0x7a] sm:$0xff] }
  0x63   : > { %2764 = vmatprep.subr.msk.mxu1 %vm240_vm0, %v3109_v10  ;;  %v3502_v10 = vld [vmem:[%s3070_s23 + $0x122] sm:$0xff] }
  0x64   : > { %2731 = vmatpush3.xpose.msk.msra.mxu0 %vm240_vm0, %v3469_v3 }
  0x65   : > { %2732 = vmatprep.subr.msk.mxu0 %vm240_vm0, %v3474_v2 }
  0x66   : > { %2765 = vmatpush3.xpose.msk.msra.mxu1 %vm240_vm0, %v3121_v13  ;;  %v3497_v13 = vld [vmem:[%s3070_s23 + $0x6a] sm:$0xff] }
  0x67   : > { %2766 = vmatprep.subr.msk.mxu1 %vm240_vm0, %v3129_v15  ;;  %v3516_v15 = vld [vmem:[%s3070_s23 + $0x112] sm:$0xff] }
  0x68   : > { %2733 = vmatpush3.xpose.msk.msra.mxu0 %vm240_vm0, %v3483_v8 }
  0x69   : > { %2734 = vmatprep.subr.msk.mxu0 %vm240_vm0, %v3488_v6 }
  0x6a   : > { %2767 = vmatpush3.xpose.msk.msra.mxu1 %vm240_vm0, %v3141_v17  ;;  %v3511_v17 = vld [vmem:[%s3070_s23 + $0x62] sm:$0xff] }
  0x6b   : > { %2768 = vmatprep.subr.msk.mxu1 %vm240_vm0, %v3149_v19  ;;  %v3530_v19 = vld [vmem:[%s3070_s23 + $0x10a] sm:$0xff] }
  0x6c   : > { %2735 = vmatpush3.xpose.msk.msra.mxu0 %vm240_vm0, %v3497_v13  ;;  %4097 = vst [vmem:[#allocation36_spill] sm:$0xff] %v3530_v19 }
  0x6d   : > { %2736 = vmatprep.subr.msk.mxu0 %vm240_vm0, %v3502_v10 }
  0x6e   : > { %2769 = vmatpush3.xpose.msk.msra.mxu1 %vm240_vm0, %v3161_v21  ;;  %v3525_v21 = vld [vmem:[%s3070_s23 + $0x52] sm:$0xff] }
  0x6f   : > { %2770 = vmatprep.subr.msk.mxu1 %vm240_vm0, %v3169_v23  ;;  %4096 = vst [vmem:[#allocation35_spill] sm:$0xff] %v3525_v21  ;;  %v3544_v23 = vld [vmem:[%s3070_s23 + $0xfa] sm:$0xff] }
  0x70   : > { %2737 = vmatpush3.xpose.msk.msra.mxu0 %vm240_vm0, %v3511_v17  ;;  %4099 = vst [vmem:[#allocation38_spill] sm:$0xff] %v3544_v23 }
  0x71   : > { %2738 = vmatprep.subr.msk.mxu0 %vm240_vm0, %v3516_v15 }
  0x72   : > { %2771 = vmatpush3.xpose.msk.msra.mxu1 %vm240_vm0, %v3181_v25  ;;  %v3539_v25 = vld [vmem:[%s3070_s23 + $0x4a] sm:$0xff] }
  0x73   : > { %2772 = vmatprep.subr.msk.mxu1 %vm240_vm0, %v3189_v27  ;;  %4098 = vst [vmem:[#allocation37_spill] sm:$0xff] %v3539_v25  ;;  %v3558_v27 = vld [vmem:[%s3070_s23 + $0xf2] sm:$0xff] }
  0x74   : > { %2739 = vmatpush3.xpose.msk.msra.mxu0 %vm240_vm0, %v3525_v21  ;;  %4101 = vst [vmem:[#allocation40_spill] sm:$0xff] %v3558_v27 }
  0x75   : > { %2740 = vmatprep.subr.msk.mxu0 %vm240_vm0, %v3530_v19 }
  0x76   : > { %2773 = vmatpush3.xpose.msk.msra.mxu1 %vm240_vm0, %v3201_v29  ;;  %v3553_v29 = vld [vmem:[%s3070_s23 + $0x3a] sm:$0xff] }
  0x77   : > { %2774 = vmatprep.subr.msk.mxu1 %vm240_vm0, %v3209_v31  ;;  %4100 = vst [vmem:[#allocation39_spill] sm:$0xff] %v3553_v29  ;;  %v3572_v31 = vld [vmem:[%s3070_s23 + $0xe2] sm:$0xff] }
  0x78   : > { %2741 = vmatpush3.xpose.msk.msra.mxu0 %vm240_vm0, %v3539_v25 }
  0x79   : > { %2742 = vmatprep.subr.msk.mxu0 %vm240_vm0, %v3544_v23 }
  0x7a   : > { %2775 = vmatpush3.xpose.msk.msra.mxu1 %vm240_vm0, %v3221_v33  ;;  %v3567_v33 = vld [vmem:[%s3070_s23 + $0x32] sm:$0xff] }
  0x7b   : > { %2776 = vmatprep.subr.msk.mxu1 %vm240_vm0, %v3229_v35  ;;  %4102 = vst [vmem:[#allocation41_spill] sm:$0xff] %v3567_v33  ;;  %v3586_v35 = vld [vmem:[%s3070_s23 + $0xda] sm:$0xff] }
  0x7c   : > { %2743 = vmatpush3.xpose.msk.msra.mxu0 %vm240_vm0, %v3553_v29 }
  0x7d   : > { %2744 = vmatprep.subr.msk.mxu0 %vm240_vm0, %v3558_v27 }
  0x7e   : > { %2777 = vmatpush3.xpose.msk.msra.mxu1 %vm240_vm0, %v3241_v37  ;;  %v3581_v37 = vld [vmem:[%s3070_s23 + $0x22] sm:$0xff] }
  0x7f   : > { %2778 = vmatprep.subr.msk.mxu1 %vm240_vm0, %v3249_v39  ;;  %v3612_v39 = vld [vmem:[%s3070_s23 + $0xc2] sm:$0xff] }
  0x80   : > { %2745 = vmatpush3.xpose.msk.msra.mxu0 %vm240_vm0, %v3567_v33 }
  0x81   : > { %2746 = vmatprep.subr.msk.mxu0 %vm240_vm0, %v3572_v31 }
  0x82   : > { %2779 = vmatpush3.xpose.msk.msra.mxu1 %vm240_vm0, %v3264_v42  ;;  %v3595_v42 = vld [vmem:[%s3070_s23 + $0x1a] sm:$0xff] }
  0x83   : > { %2780 = vmatprep.subr.msk.mxu1 %vm240_vm0, %v3272_v44  ;;  %4103 = vst [vmem:[#allocation42_spill] sm:$0xff] %v3595_v42  ;;  %v3600_v44 = vld [vmem:[%s3070_s23 + $0xca] sm:$0xff] }
  0x84   : > { %2747 = vmatpush3.xpose.msk.msra.mxu0 %vm240_vm0, %v3581_v37 }
  0x85   : > { %2748 = vmatprep.subr.msk.mxu0 %vm240_vm0, %v3586_v35 }
  0x86   : > { %2781 = vmatpush3.xpose.msk.msra.mxu1 %vm240_vm0, %v3284_v46  ;;  %v620_v46 = vld [vmem:[%s3070_s23 + $0xa] sm:$0xff] }
  0x87   : > { %2782 = vmatprep.subr.msk.mxu1 %vm240_vm0, %v3292_v48  ;;  %v3623_v48 = vld [vmem:[%s3070_s23 + $0x189] sm:$0xff] }
  0x88   : > { %2749 = vmatpush3.xpose.msk.msra.mxu0 %vm240_vm0, %v3595_v42  ;;  %v3626_v42 = vld [vmem:[%s3070_s23 + $0x18a] sm:$0xff] }
  0x89   : > { %2750 = vmatprep.subr.msk.mxu0 %vm240_vm0, %v3600_v44 }
  0x8a   : > { %2783 = vmatpush3.xpose.msk.msra.mxu1 %vm240_vm0, %v3304_v50  ;;  %v619_v50 = vld [vmem:[%s3070_s23 + $0x2] sm:$0xff] }
  0x8b   : > { %2784 = vmatprep.subr.msk.mxu1 %vm240_vm0, %v3312_v52 }
  0x8c   : > { %2751 = vmatpush3.xpose.msk.msra.mxu0 %vm240_vm0, %v620_v46  ;;  %v3636_v46 = vld [vmem:[%s3070_s23 + $0x181] sm:$0xff] }
  0x8d   : > { %2752 = vmatprep.subr.msk.mxu0 %vm240_vm0, %v3612_v39 }
  0x8e   : > { %2785 = vmatpush3.xpose.msk.msra.mxu1 %vm240_vm0, %v3324_v54  ;;  %v3639_v54 = vld [vmem:[%s3070_s23 + $0x182] sm:$0xff] }
  0x8f   : > { %2786 = vmatprep.subr.msk.mxu1 %vm240_vm0, %v3332_v56 }
  0x90   : > { %2753 = vmatpush3.xpose.msk.msra.mxu0 %vm240_vm0, %v619_v50  ;;  %v3648_v50 = vld [vmem:[%s4016_s1 + $0x20] sm:$0xff] }
  0x91   : > { %2790 = vmatprep.subr.msk.mxu0 %vm240_vm0, %v3623_v48 }
  0x92   : > { %2787 = vmatpush3.xpose.msk.msra.mxu1 %vm240_vm0, %v3344_v58  ;;  %v3653_v58 = vld [vmem:[%s4016_s1 + $0x28] sm:$0xff] }
  0x93   : > { %2824 = vmatprep.subr.msk.mxu1 %vm240_vm0, %v3626_v42  ;;  %2755 = vmatmul.mubr.msk.f32.vlgmr.msra.gmra.mxu0 %vm240_vm0, %v3409_v57  ;;  %v4104_v57 = vld [vmem:[#allocation26_spill] sm:$0xff] }
  0x94   : > { %2791 = vmatpush3.xpose.msk.msra.mxu0 %vm240_vm0, %v3355_v61  ;;  %2822 = vmatprep.mubr.msk.f32.mxu0 %vm240_vm0, %v3648_v50 }
  0x95   : > { %2789 = vmatmul.mubr.msk.f32.vlgmr.msra.gmra.mxu1 %vm240_vm0, %v3414_v59  ;;  %2792 = vmatprep.subr.msk.mxu0 %vm240_vm0, %v3636_v46  ;;  %v4105_v59 = vld [vmem:[#allocation27_spill] sm:$0xff] }
  0x96   : > { %2825 = vmatpush3.xpose.msk.msra.mxu1 %vm240_vm0, %v3600_v44  ;;  %2856 = vmatprep.mubr.msk.f32.mxu1 %vm240_vm0, %v3653_v58 }
  0x97   : > { %2826 = vmatprep.subr.msk.mxu1 %vm240_vm0, %v3639_v54 }
  0x98   : > { %2793 = vmatpush3.xpose.msk.msra.mxu0 %vm240_vm0, %v3371_v41 }
  0x99   : > { %2794 = vmatprep.subr.msk.mxu0 %vm240_vm0, %v3079_v4 }
  0x9a   : > { %2827 = vmatpush3.xpose.msk.msra.mxu1 %vm240_vm0, %v3612_v39 }
  0x9b   : > { %2828 = vmatprep.subr.msk.mxu1 %vm240_vm0, %v3382_v55 }
  0x9c   : > { %2795 = vmatpush3.xpose.msk.msra.mxu0 %vm240_vm0, %v3086_v5 }
  0x9d   : > { %2796 = vmatprep.subr.msk.mxu0 %vm240_vm0, %v3096_v7 }
  0x9e   : > { %2829 = vmatpush3.xpose.msk.msra.mxu1 %vm240_vm0, %v3392_v62 }
  0x9f   : > { %2830 = vmatprep.subr.msk.mxu1 %vm240_vm0, %v3397_v63 }
  0xa0   : > { %2797 = vmatpush3.xpose.msk.msra.mxu0 %vm240_vm0, %v3106_v9 }
  0xa1   : > { %2798 = vmatprep.subr.msk.mxu0 %vm240_vm0, %v3112_v11 }
  0xa2   : > { %2831 = vmatpush3.xpose.msk.msra.mxu1 %vm240_vm0, %v3423_v0 }
  0xa3   : > { %2832 = vmatprep.subr.msk.mxu1 %vm240_vm0, %v3428_v1 }
  0xa4   : > { %2799 = vmatpush3.xpose.msk.msra.mxu0 %vm240_vm0, %v3126_v14 }
  0xa5   : > { %2800 = vmatprep.subr.msk.mxu0 %vm240_vm0, %v3132_v16 }
  0xa6   : > { %2833 = vmatpush3.xpose.msk.msra.mxu1 %vm240_vm0, %v3441_v51 }
  0xa7   : > { %2834 = vmatprep.subr.msk.mxu1 %vm240_vm0, %v3446_v60 }
  0xa8   : > { %2801 = vmatpush3.xpose.msk.msra.mxu0 %vm240_vm0, %v3146_v18 }
  0xa9   : > { %2802 = vmatprep.subr.msk.mxu0 %vm240_vm0, %v3152_v20 }
  0xaa   : > { %2835 = vmatpush3.xpose.msk.msra.mxu1 %vm240_vm0, %v3455_v12 }
  0xab   : > { %2836 = vmatprep.subr.msk.mxu1 %vm240_vm0, %v3460_v53 }
  0xac   : > { %2803 = vmatpush3.xpose.msk.msra.mxu0 %vm240_vm0, %v3166_v22 }
  0xad   : > { %2804 = vmatprep.subr.msk.mxu0 %vm240_vm0, %v3172_v24 }
  0xae   : > { %2837 = vmatpush3.xpose.msk.msra.mxu1 %vm240_vm0, %v3469_v3 }
  0xaf   : > { %2838 = vmatprep.subr.msk.mxu1 %vm240_vm0, %v3474_v2 }
  0xb0   : > { %2805 = vmatpush3.xpose.msk.msra.mxu0 %vm240_vm0, %v3186_v26 }
  0xb1   : > { %2806 = vmatprep.subr.msk.mxu0 %vm240_vm0, %v3192_v28 }
  0xb2   : > { %2839 = vmatpush3.xpose.msk.msra.mxu1 %vm240_vm0, %v3483_v8 }
  0xb3   : > { %2840 = vmatprep.subr.msk.mxu1 %vm240_vm0, %v3488_v6 }
  0xb4   : > { %2807 = vmatpush3.xpose.msk.msra.mxu0 %vm240_vm0, %v3206_v30 }
  0xb5   : > { %2808 = vmatprep.subr.msk.mxu0 %vm240_vm0, %v3212_v32 }
  0xb6   : > { %2841 = vmatpush3.xpose.msk.msra.mxu1 %vm240_vm0, %v3497_v13 }
  0xb7   : > { %2842 = vmatprep.subr.msk.mxu1 %vm240_vm0, %v3502_v10 }
  0xb8   : > { %2809 = vmatpush3.xpose.msk.msra.mxu0 %vm240_vm0, %v3226_v34 }
  0xb9   : > { %2810 = vmatprep.subr.msk.mxu0 %vm240_vm0, %v3232_v36 }
  0xba   : > { %2843 = vmatpush3.xpose.msk.msra.mxu1 %vm240_vm0, %v3511_v17 }
  0xbb   : > { %2844 = vmatprep.subr.msk.mxu1 %vm240_vm0, %v3516_v15 }
  0xbc   : > { %2811 = vmatpush3.xpose.msk.msra.mxu0 %vm240_vm0, %v3246_v38 }
  0xbd   : > { %2812 = vmatprep.subr.msk.mxu0 %vm240_vm0, %v3252_v40 }
  0xbe   : > { %2845 = vmatpush3.xpose.msk.msra.mxu1 %vm240_vm0, %v3525_v21  ;;  %v3796_v21 = vld [vmem:[%s4016_s1 + $0x30] sm:$0xff] }
  0xbf   : > { %2846 = vmatprep.subr.msk.mxu1 %vm240_vm0, %v3530_v19  ;;  %v4109_v19 = vld [vmem:[#allocation42_spill] sm:$0xff] }
  0xc0   : > { %2813 = vmatpush3.xpose.msk.msra.mxu0 %vm240_vm0, %v3269_v43 }
  0xc1   : > { %2814 = vmatprep.subr.msk.mxu0 %vm240_vm0, %v3275_v45 }
  0xc2   : > { %2847 = vmatpush3.xpose.msk.msra.mxu1 %vm240_vm0, %v3539_v25  ;;  %v4108_v25 = vld [vmem:[#allocation30_spill] sm:$0xff] }
  0xc3   : > { %2848 = vmatprep.subr.msk.mxu1 %vm240_vm0, %v3544_v23  ;;  %v2484_v23 = vld [vmem:[%s3070_s23 + $0x1a0] sm:$0xff] }
  0xc4   : > { %2815 = vmatpush3.xpose.msk.msra.mxu0 %vm240_vm0, %v3289_v47 }
  0xc5   : > { %2816 = vmatprep.subr.msk.mxu0 %vm240_vm0, %v3295_v49 }
  0xc6   : > { %2849 = vmatpush3.xpose.msk.msra.mxu1 %vm240_vm0, %v3553_v29  ;;  %v4106_v29 = vld [vmem:[#allocation28_spill] sm:$0xff] }
  0xc7   : > { %2850 = vmatprep.subr.msk.mxu1 %vm240_vm0, %v3558_v27  ;;  %v4107_v27 = vld [vmem:[#allocation29_spill] sm:$0xff] }
  0xc8   : > { %2817 = vmatpush3.xpose.msk.msra.mxu0 %vm240_vm0, %v4104_v57 }
  0xc9   : > { %2818 = vmatprep.subr.msk.mxu0 %vm240_vm0, %v4105_v59 }
  0xca   : > { %2851 = vmatpush3.xpose.msk.msra.mxu1 %vm240_vm0, %v3567_v33  ;;  %v2550_v33 = vld [vmem:[%s3070_s23 + $0x1a1] sm:$0xff] }
  0xcb   : > { %2852 = vmatprep.subr.msk.mxu1 %vm240_vm0, %v3572_v31 }
  0xcc   : > { %2819 = vmatpush3.xpose.msk.msra.mxu0 %vm240_vm0, %v4106_v29  ;;  %v2483_v29 = vld [vmem:[%s3070_s23 + $0x198] sm:$0xff] }
  0xcd   : > { %2820 = vmatprep.subr.msk.mxu0 %vm240_vm0, %v4107_v27 }
  0xce   : > { %2853 = vmatpush3.xpose.msk.msra.mxu1 %vm240_vm0, %v3581_v37  ;;  %v2549_v37 = vld [vmem:[%s3070_s23 + $0x199] sm:$0xff] }
  0xcf   : > { %2854 = vmatprep.subr.msk.mxu1 %vm240_vm0, %v3586_v35 }
  0xd0   : > { %2821 = vmatpush3.xpose.msk.msra.mxu0 %vm240_vm0, %v4108_v25  ;;  %v4111_v25 = vld [vmem:[#allocation31_spill] sm:$0xff] }
  0xd1   : > { %2858 = vmatprep.subr.msk.mxu0 %vm240_vm0, %v2484_v23  ;;  %v4110_v23 = vld [vmem:[#allocation33_spill] sm:$0xff] }
  0xd2   : > { %2855 = vmatpush3.xpose.msk.msra.mxu1 %vm240_vm0, %v4109_v19  ;;  %v3801_v19 = vld [vmem:[%s4016_s1 + $0x38] sm:$0xff] }
  0xd3   : > { %2892 = vmatprep.subr.msk.mxu1 %vm240_vm0, %v2550_v33  ;;  %2823 = vmatmul.mubr.msk.f32.vlgmr.msra.gmra.mxu0 %vm240_vm0, %v3648_v50  ;;  %v4112_v33 = vld [vmem:[#allocation34_spill] sm:$0xff] }
  0xd4   : > { %2859 = vmatpush3.xpose.msk.msra.mxu0 %vm240_vm0, %v3312_v52  ;;  %2890 = vmatprep.mubr.msk.f32.mxu0 %vm240_vm0, %v3796_v21  ;;  %v4113_v52 = vld [vmem:[#allocation32_spill] sm:$0xff] }
  0xd5   : > { %2857 = vmatmul.mubr.msk.f32.vlgmr.msra.gmra.mxu1 %vm240_vm0, %v3653_v58  ;;  %2860 = vmatprep.subr.msk.mxu0 %vm240_vm0, %v2483_v29 }
  0xd6   : > { %2893 = vmatpush3.xpose.msk.msra.mxu1 %vm240_vm0, %v4105_v59  ;;  %2924 = vmatprep.mubr.msk.f32.mxu1 %vm240_vm0, %v3801_v19 }
  0xd7   : > { %2894 = vmatprep.subr.msk.mxu1 %vm240_vm0, %v2549_v37 }
  0xd8   : > { %2861 = vmatpush3.xpose.msk.msra.mxu0 %vm240_vm0, %v3332_v56  ;;  %v4116_v56 = vld [vmem:[#allocation4_spill] sm:$0xff] }
  0xd9   : > { %2862 = vmatprep.subr.msk.mxu0 %vm240_vm0, %v4110_v23 }
  0xda   : > { %2895 = vmatpush3.xpose.msk.msra.mxu1 %vm240_vm0, %v4107_v27  ;;  %v4114_v27 = vld [vmem:[#allocation2_spill] sm:$0xff] }
  0xdb   : > { %2896 = vmatprep.subr.msk.mxu1 %vm240_vm0, %v3623_v48  ;;  %v4115_v48 = vld [vmem:[#allocation3_spill] sm:$0xff] }
  0xdc   : > { %2863 = vmatpush3.xpose.msk.msra.mxu0 %vm240_vm0, %v4111_v25 }
  0xdd   : > { %2864 = vmatprep.subr.msk.mxu0 %vm240_vm0, %v4112_v33 }
  0xde   : > { %2897 = vmatpush3.xpose.msk.msra.mxu1 %vm240_vm0, %v3355_v61  ;;  %v4117_v61 = vld [vmem:[#allocation5_spill] sm:$0xff] }
  0xdf   : > { %2898 = vmatprep.subr.msk.mxu1 %vm240_vm0, %v3636_v46 }
  0xe0   : > { %2865 = vmatpush3.xpose.msk.msra.mxu0 %vm240_vm0, %v4113_v52 }
  0xe1   : > { %2866 = vmatprep.subr.msk.mxu0 %vm240_vm0, %v4114_v27 }
  0xe2   : > { %2899 = vmatpush3.xpose.msk.msra.mxu1 %vm240_vm0, %v3371_v41  ;;  %v4118_v41 = vld [vmem:[#allocation6_spill] sm:$0xff] }
  0xe3   : > { %2900 = vmatprep.subr.msk.mxu1 %vm240_vm0, %v3079_v4  ;;  %v4119_v4 = vld [vmem:[#allocation7_spill] sm:$0xff] }
  0xe4   : > { %2867 = vmatpush3.xpose.msk.msra.mxu0 %vm240_vm0, %v4115_v48 }
  0xe5   : > { %2868 = vmatprep.subr.msk.mxu0 %vm240_vm0, %v4116_v56 }
  0xe6   : > { %2901 = vmatpush3.xpose.msk.msra.mxu1 %vm240_vm0, %v3086_v5  ;;  %v4120_v5 = vld [vmem:[#allocation8_spill] sm:$0xff] }
  0xe7   : > { %2902 = vmatprep.subr.msk.mxu1 %vm240_vm0, %v3096_v7  ;;  %v4121_v7 = vld [vmem:[#allocation9_spill] sm:$0xff] }
  0xe8   : > { %2869 = vmatpush3.xpose.msk.msra.mxu0 %vm240_vm0, %v4117_v61 }
  0xe9   : > { %2870 = vmatprep.subr.msk.mxu0 %vm240_vm0, %v4118_v41 }
  0xea   : > { %2903 = vmatpush3.xpose.msk.msra.mxu1 %vm240_vm0, %v3106_v9  ;;  %v4122_v9 = vld [vmem:[#allocation10_spill] sm:$0xff] }
  0xeb   : > { %2904 = vmatprep.subr.msk.mxu1 %vm240_vm0, %v3112_v11  ;;  %v4123_v11 = vld [vmem:[#allocation11_spill] sm:$0xff] }
  0xec   : > { %2871 = vmatpush3.xpose.msk.msra.mxu0 %vm240_vm0, %v4119_v4 }
  0xed   : > { %2872 = vmatprep.subr.msk.mxu0 %vm240_vm0, %v4120_v5 }
  0xee   : > { %2905 = vmatpush3.xpose.msk.msra.mxu1 %vm240_vm0, %v3126_v14  ;;  %v4124_v14 = vld [vmem:[#allocation12_spill] sm:$0xff] }
  0xef   : > { %2906 = vmatprep.subr.msk.mxu1 %vm240_vm0, %v3132_v16  ;;  %v4125_v16 = vld [vmem:[#allocation13_spill] sm:$0xff] }
  0xf0   : > { %2873 = vmatpush3.xpose.msk.msra.mxu0 %vm240_vm0, %v4121_v7 }
  0xf1   : > { %2874 = vmatprep.subr.msk.mxu0 %vm240_vm0, %v4122_v9 }
  0xf2   : > { %2907 = vmatpush3.xpose.msk.msra.mxu1 %vm240_vm0, %v3146_v18  ;;  %v4126_v18 = vld [vmem:[#allocation14_spill] sm:$0xff] }
  0xf3   : > { %2908 = vmatprep.subr.msk.mxu1 %vm240_vm0, %v3152_v20  ;;  %v4127_v20 = vld [vmem:[#allocation15_spill] sm:$0xff] }
  0xf4   : > { %2875 = vmatpush3.xpose.msk.msra.mxu0 %vm240_vm0, %v4123_v11 }
  0xf5   : > { %2876 = vmatprep.subr.msk.mxu0 %vm240_vm0, %v4124_v14 }
  0xf6   : > { %2909 = vmatpush3.xpose.msk.msra.mxu1 %vm240_vm0, %v3166_v22  ;;  %v4128_v22 = vld [vmem:[#allocation16_spill] sm:$0xff] }
  0xf7   : > { %2910 = vmatprep.subr.msk.mxu1 %vm240_vm0, %v3172_v24  ;;  %v4129_v24 = vld [vmem:[#allocation17_spill] sm:$0xff] }
  0xf8   : > { %2877 = vmatpush3.xpose.msk.msra.mxu0 %vm240_vm0, %v4125_v16 }
  0xf9   : > { %2878 = vmatprep.subr.msk.mxu0 %vm240_vm0, %v4126_v18 }
  0xfa   : > { %2911 = vmatpush3.xpose.msk.msra.mxu1 %vm240_vm0, %v3186_v26  ;;  %v4130_v26 = vld [vmem:[#allocation18_spill] sm:$0xff] }
  0xfb   : > { %2912 = vmatprep.subr.msk.mxu1 %vm240_vm0, %v3192_v28  ;;  %v4131_v28 = vld [vmem:[#allocation19_spill] sm:$0xff] }
  0xfc   : > { %2879 = vmatpush3.xpose.msk.msra.mxu0 %vm240_vm0, %v4127_v20 }
  0xfd   : > { %2880 = vmatprep.subr.msk.mxu0 %vm240_vm0, %v4128_v22 }
  0xfe   : > { %2913 = vmatpush3.xpose.msk.msra.mxu1 %vm240_vm0, %v3206_v30  ;;  %v4132_v30 = vld [vmem:[#allocation20_spill] sm:$0xff] }
  0xff   : > { %2914 = vmatprep.subr.msk.mxu1 %vm240_vm0, %v3212_v32  ;;  %v4133_v32 = vld [vmem:[#allocation21_spill] sm:$0xff] }
 0x100   : > { %2881 = vmatpush3.xpose.msk.msra.mxu0 %vm240_vm0, %v4129_v24 }
 0x101   : > { %2882 = vmatprep.subr.msk.mxu0 %vm240_vm0, %v4130_v26 }
 0x102   : > { %2915 = vmatpush3.xpose.msk.msra.mxu1 %vm240_vm0, %v3226_v34  ;;  %v4134_v34 = vld [vmem:[#allocation22_spill] sm:$0xff] }
 0x103   : > { %2916 = vmatprep.subr.msk.mxu1 %vm240_vm0, %v3232_v36  ;;  %v4135_v36 = vld [vmem:[#allocation23_spill] sm:$0xff] }
 0x104   : > { %2883 = vmatpush3.xpose.msk.msra.mxu0 %vm240_vm0, %v4131_v28 }
 0x105   : > { %2884 = vmatprep.subr.msk.mxu0 %vm240_vm0, %v4132_v30 }
 0x106   : > { %2917 = vmatpush3.xpose.msk.msra.mxu1 %vm240_vm0, %v3246_v38  ;;  %v4136_v38 = vld [vmem:[#allocation24_spill] sm:$0xff] }
 0x107   : > { %2918 = vmatprep.subr.msk.mxu1 %vm240_vm0, %v3252_v40  ;;  %v2616_v40 = vld [vmem:[%s3070_s23 + $0x1a2] sm:$0xff] }
 0x108   : > { %2885 = vmatpush3.xpose.msk.msra.mxu0 %vm240_vm0, %v4133_v32 }
 0x109   : > { %2886 = vmatprep.subr.msk.mxu0 %vm240_vm0, %v4134_v34 }
 0x10a   : > { %2919 = vmatpush3.xpose.msk.msra.mxu1 %vm240_vm0, %v3269_v43  ;;  %v4137_v43 = vld [vmem:[#allocation25_spill] sm:$0xff] }
 0x10b   : > { %2920 = vmatprep.subr.msk.mxu1 %vm240_vm0, %v3275_v45  ;;  %v2617_v45 = vld [vmem:[%s4016_s1 + $0x40] sm:$0xff] }
 0x10c   : > { %2887 = vmatpush3.xpose.msk.msra.mxu0 %vm240_vm0, %v4135_v36 }
 0x10d   : > { %2888 = vmatprep.subr.msk.mxu0 %vm240_vm0, %v4136_v38 }
 0x10e   : > { %2921 = vmatpush3.xpose.msk.msra.mxu1 %vm240_vm0, %v3289_v47  ;;  %v2615_v47 = vld [vmem:[%s3070_s23 + $0x19a] sm:$0xff] }
 0x10f   : > { %2922 = vmatprep.subr.msk.mxu1 %vm240_vm0, %v3295_v49 }
 0x110   : > { %2889 = vmatpush3.xpose.msk.msra.mxu0 %vm240_vm0, %v4137_v43 }
 0x111   : > { %2926 = vmatprep.subr.msk.mxu0 %vm240_vm0, %v2616_v40 }
 0x112   : > { %2923 = vmatpush3.xpose.msk.msra.mxu1 %vm240_vm0, %v4104_v57 }
 0x113   : > { %2891 = vmatmul.mubr.msk.f32.vlgmr.msra.gmra.mxu0 %vm240_vm0, %v3796_v21  ;;  %v205_v21 = vpop.permute.xlu0 %204 }
 0x114   : > { %2927 = vmatpush3.xpose.msk.msra.mxu0 %vm240_vm0, %v3572_v31  ;;  %2958 = vmatprep.mubr.msk.f32.mxu0 %vm240_vm0, %v2617_v45 }
 0x115   : > { %2925 = vmatmul.mubr.msk.f32.vlgmr.msra.gmra.mxu1 %vm240_vm0, %v3801_v19  ;;  %2928 = vmatprep.subr.msk.mxu0 %vm240_vm0, %v2615_v47 }
 0x118   : > { %2929 = vmatpush3.xpose.msk.msra.mxu0 %vm240_vm0, %v3586_v35  ;;  %v612_v35 = vpop.f32.mrf.mxu1 }
 0x119   : > { %2930 = vmatprep.subr.msk.mxu0 %vm240_vm0, %v3626_v42 }
 0x11a   : > { %v614_v49 = vpop.f32.mrf.mxu1 }
 0x11c   : > { %2931 = vmatpush3.xpose.msk.msra.mxu0 %vm240_vm0, %v3600_v44 }
 0x11d   : > { %2932 = vmatprep.subr.msk.mxu0 %vm240_vm0, %v3639_v54 }
 0x120   : > { %2933 = vmatpush3.xpose.msk.msra.mxu0 %vm240_vm0, %v3612_v39 }
 0x121   : > { %2934 = vmatprep.subr.msk.mxu0 %vm240_vm0, %v3382_v55 }
 0x124   : > { %2935 = vmatpush3.xpose.msk.msra.mxu0 %vm240_vm0, %v3392_v62 }
 0x125   : > { %2936 = vmatprep.subr.msk.mxu0 %vm240_vm0, %v3397_v63 }
 0x128   : > { %2937 = vmatpush3.xpose.msk.msra.mxu0 %vm240_vm0, %v3423_v0 }
 0x129   : > { %2938 = vmatprep.subr.msk.mxu0 %vm240_vm0, %v3428_v1 }
 0x12c   : > { %2939 = vmatpush3.xpose.msk.msra.mxu0 %vm240_vm0, %v3441_v51 }
 0x12d   : > { %2940 = vmatprep.subr.msk.mxu0 %vm240_vm0, %v3446_v60 }
 0x130   : > { %2941 = vmatpush3.xpose.msk.msra.mxu0 %vm240_vm0, %v3455_v12 }
 0x131   : > { %2942 = vmatprep.subr.msk.mxu0 %vm240_vm0, %v3460_v53 }
 0x134   : > { %2943 = vmatpush3.xpose.msk.msra.mxu0 %vm240_vm0, %v3469_v3  ;;  %v4138_v3 = vld [vmem:[#allocation35_spill] sm:$0xff] }
 0x135   : > { %2944 = vmatprep.subr.msk.mxu0 %vm240_vm0, %v3474_v2  ;;  %v4139_v2 = vld [vmem:[#allocation36_spill] sm:$0xff] }
 0x138   : > { %2945 = vmatpush3.xpose.msk.msra.mxu0 %vm240_vm0, %v3483_v8  ;;  %v4140_v8 = vld [vmem:[#allocation37_spill] sm:$0xff] }
 0x139   : > { %2946 = vmatprep.subr.msk.mxu0 %vm240_vm0, %v3488_v6  ;;  %v4141_v6 = vld [vmem:[#allocation38_spill] sm:$0xff] }
 0x13c   : > { %2947 = vmatpush3.xpose.msk.msra.mxu0 %vm240_vm0, %v3497_v13  ;;  %v4142_v13 = vld [vmem:[#allocation39_spill] sm:$0xff] }
 0x13d   : > { %2948 = vmatprep.subr.msk.mxu0 %vm240_vm0, %v3502_v10  ;;  %v4143_v10 = vld [vmem:[#allocation40_spill] sm:$0xff] }
 0x140   : > { %2949 = vmatpush3.xpose.msk.msra.mxu0 %vm240_vm0, %v3511_v17  ;;  %v4144_v17 = vld [vmem:[#allocation41_spill] sm:$0xff] }
 0x141   : > { %2950 = vmatprep.subr.msk.mxu0 %vm240_vm0, %v3516_v15  ;;  %v406_v15 = vpop.f32.mrf.mxu0 }
 0x142   : > { %v411_v39 = vadd.f32 %v406_v15, %v205_v21 }
 0x143   : > { %v408_v31 = vpop.f32.mrf.mxu0 }
 0x144   : > { %2951 = vmatpush3.xpose.msk.msra.mxu0 %vm240_vm0, %v4138_v3  ;;  %v412_v44 = vadd.f32 %v408_v31, %v205_v21  ;;  %v617_v51 = vadd.f32 %v612_v35, %v411_v39 }
 0x145   : > { %2952 = vmatprep.subr.msk.mxu0 %vm240_vm0, %v4139_v2 }
 0x146   : > { %v618_v60 = vadd.f32 %v614_v49, %v412_v44 }
 0x148   : > { %2953 = vmatpush3.xpose.msk.msra.mxu0 %vm240_vm0, %v4140_v8 }
 0x149   : > { %2954 = vmatprep.subr.msk.mxu0 %vm240_vm0, %v4141_v6 }
 0x14c   : > { %2955 = vmatpush3.xpose.msk.msra.mxu0 %vm240_vm0, %v4142_v13 }
 0x14d   : > { %2956 = vmatprep.subr.msk.mxu0 %vm240_vm0, %v4143_v10 }
 0x150   : > { %2957 = vmatpush3.xpose.msk.msra.mxu0 %vm240_vm0, %v4144_v17 }
 0x153   : > { %2959 = vmatmul.mubr.msk.f32.vlgmr.msra.gmra.mxu0 %vm240_vm0, %v2617_v45  ;;  %v818_v42 = vpop.f32.mrf.mxu0 }
 0x154   : > { %v823_v12 = vadd.f32 %v818_v42, %v617_v51 }
 0x155   : > { %v820_v53 = vpop.f32.mrf.mxu0  ;;  %v1025_v55 = vpop.f32.mrf.mxu1 }
 0x156   : > { %v824_v63 = vadd.f32 %v820_v53, %v618_v60  ;;  %v1030_v1 = vadd.f32 %v1025_v55, %v823_v12 }
 0x157   : > { %v1027_v0 = vpop.f32.mrf.mxu1 }
 0x158   : > { %v1031_v50 = vadd.f32 %v1027_v0, %v824_v63 }
 0x193   : > { %v1231_v62 = vpop.f32.mrf.mxu0 }
 0x194   : > { %v1236_v58 = vadd.f32 %v1231_v62, %v1030_v1 }
 0x195   : > { %v1233_v46 = vpop.f32.mrf.mxu0  ;;  %v1437_v54 = vpop.f32.mrf.mxu1 }
 0x196   : > { %v1237_v59 = vadd.f32 %v1233_v46, %v1031_v50  ;;  %v1442_v37 = vadd.f32 %v1437_v54, %v1236_v58 }
 0x197   : > { %v1439_v29 = vpop.f32.mrf.mxu1 }
 0x198   : > { %v1443_v25 = vadd.f32 %v1439_v29, %v1237_v59 }
 0x1d3   : > { %v1644_v57 = vpop.f32.mrf.mxu0 }
 0x1d4   : > { %v1649_v33 = vadd.f32 %v1644_v57, %v1442_v37 }
 0x1d5   : > { %v1646_v19 = vpop.f32.mrf.mxu0  ;;  %v1850_v23 = vpop.f32.mrf.mxu1 }
 0x1d6   : > { %v1650_v52 = vadd.f32 %v1646_v19, %v1443_v25  ;;  %v1855_v48 = vadd.f32 %v1850_v23, %v1649_v33 }
 0x1d7   : > { %v1852_v27 = vpop.f32.mrf.mxu1 }
 0x1d8   : > { %v1856_v61 = vadd.f32 %v1852_v27, %v1650_v52 }
 0x213   : > { %v2056_v56 = vpop.f32.mrf.mxu0 }
 0x214   : > { %v2061_v41 = vadd.f32 %v2056_v56, %v1855_v48 }
 0x215   : > { %v2058_v4 = vpop.f32.mrf.mxu0 }
 0x216   : > { %2063 = vst [vmem:[%s199_s20] sm:$0xff] %v2061_v41  ;;  %v2062_v5 = vadd.f32 %v2058_v4, %v1856_v61 }
 0x218   : > { %2064 = vst [vmem:[%s199_s20 + $0x8] sm:$0xff] %v2062_v5 }
 0x219 PF: > { %s13_s14 = sadd.s32 1, %s3009_s14   ;;  %s4145_s12 = smov %s3005_s13 }
 0x21a   : > { %p10_p5 = scmp.ge.s32.totalorder %s13_s14, 4   ;;  %s4146_s13 = smov %s4148_s15 }
 0x21c   :  { %12 = sbr.rel (!%p10_p5) target bundleno = 2 (0x2), region = 72 }

</bundles_post_ra>
